<compile_context>
chip_gen: v6e
topology: v6e:2x2x1
jax: 0.10.0
libtpu: 0.0.40
codegen_flags: <defaults>
</compile_context>

<pallas_src>
import math

import jax
import jax.numpy as jnp
from jax.experimental import pallas as pl
from jax.experimental.pallas import tpu as pltpu


def _round_up(x, m):
    return (x + m - 1) // m * m


def _erf(x):
    # Abramowitz & Stegun 7.1.26 rational approximation of erf, built only from
    # ops that lower cleanly in Mosaic.  The 1/(1+p*z) goes to the EUP via
    # pl.reciprocal(approx=True): ~1e-4 accuracy, and the EUP slot is otherwise
    # idle so it co-issues with the MXU/VPU work.
    a1, a2, a3, a4, a5 = (0.254829592, -0.284496736, 1.421413741,
                          -1.453152027, 1.061405429)
    p = 0.3275911
    z = jnp.abs(x)
    t = pl.reciprocal(1.0 + p * z, approx=True)
    poly = ((((a5 * t + a4) * t + a3) * t + a2) * t + a1) * t
    e = 1.0 - poly * jnp.exp(-z * z)
    return jnp.where(x >= 0.0, e, -e)


def _gelu_exact(x):
    # torch.nn.GELU() default: 0.5 * x * (1 + erf(x / sqrt(2)))
    return 0.5 * x * (1.0 + _erf(x * (1.0 / math.sqrt(2.0))))


def _make_ff_kernel(skip_conn: bool):
    def kernel(x_ref, w1_ref, b1_ref, w2_ref, b2_ref, o_ref):
        x = x_ref[...]                                        # (TM, Dp) f32
        # bf16 operands -> full-rate MXU; f32 accumulation preserved.
        h = jnp.dot(x.astype(jnp.bfloat16), w1_ref[...],
                    preferred_element_type=jnp.float32)       # (TM, Hp) f32
        h = _gelu_exact(h + b1_ref[...])
        # TODO(synk): Dropout with p>0 in training mode would need pltpu.prng_*;
        # the module default (p=0.0 / eval) is an identity, implemented as such.
        y = jnp.dot(h.astype(jnp.bfloat16), w2_ref[...],
                    preferred_element_type=jnp.float32)       # (TM, Dp) f32
        y = _gelu_exact(y + b2_ref[...])
        if skip_conn:
            y = y + x                                         # residual in f32
        o_ref[...] = y.astype(o_ref.dtype)
    return kernel


def prepare_params(params):
    """One-time weight preparation (hoisted out of the per-call forward path).

    params = (w1, b1, w2, b2) in torch layout:
      w1: (hidden, dim), b1: (hidden,), w2: (dim, hidden), b2: (dim,), dim = H*W.
    Returns lane-dense 128-padded, pre-transposed matrices: bf16 weights (MXU
    operands) and f32 biases.
    """
    w1, b1, w2, b2 = params
    Hd, D = w1.shape
    Dp = _round_up(D, 128)
    Hp = _round_up(Hd, 128)
    w1m = jnp.pad(jnp.transpose(w1).astype(jnp.bfloat16),
                  ((0, Dp - D), (0, Hp - Hd)))                 # (Dp, Hp) bf16
    b1m = jnp.pad(b1.astype(jnp.float32).reshape(1, Hd), ((0, 0), (0, Hp - Hd)))
    w2m = jnp.pad(jnp.transpose(w2).astype(jnp.bfloat16),
                  ((0, Hp - Hd), (0, Dp - D)))                 # (Hp, Dp) bf16
    b2m = jnp.pad(b2.astype(jnp.float32).reshape(1, D), ((0, 0), (0, Dp - D)))
    return w1m, b1m, w2m, b2m


def _choose_row_tile(M, row_tile):
    # Multiple-of-8 clamp (sublane constraint on the f32 row tiles), capped at
    # `row_tile`, and aiming for >= 2 grid steps so the "parallel" row axis can
    # actually shard across v7x's two TensorCores (and pipeline x/out DMAs).
    cap = max(8, _round_up(row_tile, 8))
    return min(cap, max(8, _round_up((M + 1) // 2, 8)))


def feed_forward(x_nchw, prepared_params, *, skip_conn=False, row_tile=512):
    """Fused Pallas forward. prepared_params = prepare_params((w1, b1, w2, b2))."""
    w1m, b1m, w2m, b2m = prepared_params
    B, C, H, W = x_nchw.shape
    D = H * W
    Dp, Hp = w1m.shape
    if Dp != _round_up(D, 128):
        raise ValueError("prepared params do not match x's spatial size")

    M = B * C
    x2d = x_nchw.reshape(M, D).astype(jnp.float32)

    TM = _choose_row_tile(M, row_tile)
    Mp = _round_up(M, TM)
    needs_pad = (Mp != M) or (Dp != D)
    xp = jnp.pad(x2d, ((0, Mp - M), (0, Dp - D))) if needs_pad else x2d

    # Advisory cost so XLA can overlap the surrounding reshape/pad/slice ops.
    cost = pl.CostEstimate(
        flops=4 * M * Dp * Hp,                      # two matmuls
        transcendentals=M * (Hp + Dp),              # one exp (+rcp) per GELU elem
        bytes_accessed=2 * M * D * 4 + 2 * Dp * Hp * 2 + (Hp + Dp) * 4,
    )

    # VMEM footprint: double-buffered x/out row tiles + resident weights/biases
    # (double-buffered by default) + in-kernel hidden-activation temporaries.
    footprint = (
        2 * 2 * TM * Dp * 4          # x + out tiles, 2 buffers each (f32)
        + 2 * 2 * Dp * Hp * 2        # W1 + W2 (bf16), 2 buffers each
        + 2 * 8 * (Hp + Dp) * 4      # biases (sublane-padded), 2 buffers
        + 3 * TM * Hp * 4            # hidden activation + GELU temps (f32)
    )
    vmem_limit = int(min(64 << 20, max(24 << 20, 2 * footprint + (4 << 20))))

    out = pl.pallas_call(
        _make_ff_kernel(skip_conn),
        out_shape=jax.ShapeDtypeStruct((Mp, Dp), jnp.float32),
        grid=(Mp // TM,),
        in_specs=[
            pl.BlockSpec((TM, Dp), lambda i: (i, 0)),    # activations (tiled rows)
            pl.BlockSpec((Dp, Hp), lambda i: (0, 0)),    # W1 (resident, bf16)
            pl.BlockSpec((1, Hp), lambda i: (0, 0)),     # b1 (f32)
            pl.BlockSpec((Hp, Dp), lambda i: (0, 0)),    # W2 (resident, bf16)
            pl.BlockSpec((1, Dp), lambda i: (0, 0)),     # b2 (f32)
        ],
        out_specs=pl.BlockSpec((TM, Dp), lambda i: (i, 0)),
        compiler_params=pltpu.CompilerParams(
            dimension_semantics=("parallel",),
            vmem_limit_bytes=vmem_limit),
        cost_estimate=cost,
    )(xp, w1m, b1m, w2m, b2m)

    if needs_pad:
        out = out[:M, :D]
    return out.reshape(B, C, H, W)


def _reference(x, params, skip_conn=False):
    # Full-f32 (Precision.HIGHEST) reference with exact GELU — mirrors the torch
    # module. The kernel uses bf16 MXU operands (per the perf review), so it is
    # compared at a bf16-matmul tolerance (~1e-2), not the f32 one.
    w1, b1, w2, b2 = params
    B, C, H, W = x.shape
    xf = x.reshape(B, C, H * W)
    h = jax.nn.gelu(jnp.matmul(xf, w1.T, precision=jax.lax.Precision.HIGHEST) + b1,
                    approximate=False)
    y = jax.nn.gelu(jnp.matmul(h, w2.T, precision=jax.lax.Precision.HIGHEST) + b2,
                    approximate=False)
    if skip_conn:
        y = y + xf
    return y.reshape(B, C, H, W)


if __name__ == "__main__":
    key = jax.random.PRNGKey(0)
    kx, k1, k2, k3, k4 = jax.random.split(key, 5)

    # Small shapes consistent with the module: x (B, C, H, W); dim = H*W.
    B, C, H, W = 2, 4, 16, 16
    dim = H * W            # 256
    hidden_dim = 512

    x = jax.random.normal(kx, (B, C, H, W), jnp.float32)
    w1 = jax.random.normal(k1, (hidden_dim, dim), jnp.float32) / math.sqrt(dim)
    b1 = jax.random.normal(k2, (hidden_dim,), jnp.float32) * 0.01
    w2 = jax.random.normal(k3, (dim, hidden_dim), jnp.float32) / math.sqrt(hidden_dim)
    b2 = jax.random.normal(k4, (dim,), jnp.float32) * 0.01
    params = (w1, b1, w2, b2)

    # One-time weight prep (transpose/pad/bf16 cast) — not part of the forward path.
    prepared = prepare_params(params)

    ff = jax.jit(feed_forward, static_argnames=("skip_conn", "row_tile"))

    for skip in (False, True):
        out = jax.block_until_ready(ff(x, prepared, skip_conn=skip))
        assert out.shape == (B, C, H, W), out.shape
        exp = _reference(x, params, skip_conn=skip)
        # bf16 operands on two chained matmuls bound the error at ~5e-3 here;
        # 1e-2 is the standard bf16-matmul comparison tolerance.
        assert jnp.allclose(out, exp, rtol=1e-2, atol=1e-2), \
            float(jnp.max(jnp.abs(out - exp)))

    print("KERNEL_OK")
</pallas_src>

<mosaic_0001>
module attributes {stable_mosaic.version = 11 : i64} {
  func.func @kernel(%arg0: i32, %arg1: memref<8x256xf32, #tpu.memory_space<vmem>>, %arg2: memref<256x512xbf16, #tpu.memory_space<vmem>>, %arg3: memref<1x512xf32, #tpu.memory_space<vmem>>, %arg4: memref<512x256xbf16, #tpu.memory_space<vmem>>, %arg5: memref<1x256xf32, #tpu.memory_space<vmem>>, %arg6: memref<8x256xf32, #tpu.memory_space<vmem>>) attributes {dimension_semantics = [#tpu.dimension_semantics<parallel>], iteration_bounds = array<i64: 1>, scalar_prefetch = 0 : i64, scratch_operands = 0 : i64, tpu.core_type = #tpu.core_type<tc>, window_params = [{transform_indices = @transform_0, window_bounds = array<i64: 8, 256>}, {pipeline_mode = #tpu.pipeline_mode<synchronous>, transform_indices = @transform_1, window_bounds = array<i64: 256, 512>}, {pipeline_mode = #tpu.pipeline_mode<synchronous>, transform_indices = @transform_2, window_bounds = array<i64: 1, 512>}, {pipeline_mode = #tpu.pipeline_mode<synchronous>, transform_indices = @transform_3, window_bounds = array<i64: 512, 256>}, {pipeline_mode = #tpu.pipeline_mode<synchronous>, transform_indices = @transform_4, window_bounds = array<i64: 1, 256>}, {transform_indices = @transform_5, window_bounds = array<i64: 8, 256>}]} {
    %c0 = arith.constant 0 : index
    %c0_0 = arith.constant 0 : index
    %0 = vector.load %arg1[%c0, %c0_0] : memref<8x256xf32, #tpu.memory_space<vmem>>, vector<8x256xf32>
    %1 = arith.truncf %0 : vector<8x256xf32> to vector<8x256xbf16>
    %c0_1 = arith.constant 0 : index
    %c0_2 = arith.constant 0 : index
    %2 = vector.load %arg2[%c0_1, %c0_2] : memref<256x512xbf16, #tpu.memory_space<vmem>>, vector<256x512xbf16>
    %cst = arith.constant dense<0.000000e+00> : vector<8x512xf32>
    %3 = tpu.matmul %1, %2, %cst {dimension_numbers = #tpu.dot_dimension_numbers<[1], [0], [0], [1], [0, 0, 1, 1], [], []>} : vector<8x256xbf16>, vector<256x512xbf16>, vector<8x512xf32> -> vector<8x512xf32>
    %c0_3 = arith.constant 0 : index
    %c0_4 = arith.constant 0 : index
    %4 = vector.load %arg3[%c0_3, %c0_4] : memref<1x512xf32, #tpu.memory_space<vmem>>, vector<1x512xf32>
    %5 = vector.broadcast %4 : vector<1x512xf32> to vector<8x512xf32>
    %6 = arith.addf %3, %5 : vector<8x512xf32>
    %cst_5 = arith.constant 5.000000e-01 : f32
    %7 = vector.broadcast %cst_5 : f32 to vector<8x512xf32>
    %8 = arith.mulf %7, %6 : vector<8x512xf32>
    %cst_6 = arith.constant 0.707106769 : f32
    %9 = vector.broadcast %cst_6 : f32 to vector<8x512xf32>
    %10 = arith.mulf %6, %9 : vector<8x512xf32>
    %11 = math.absf %10 : vector<8x512xf32>
    %cst_7 = arith.constant 0.327591091 : f32
    %12 = vector.broadcast %cst_7 : f32 to vector<8x512xf32>
    %13 = arith.mulf %12, %11 : vector<8x512xf32>
    %cst_8 = arith.constant 1.000000e+00 : f32
    %14 = vector.broadcast %cst_8 : f32 to vector<8x512xf32>
    %15 = arith.addf %14, %13 : vector<8x512xf32>
    %16 = tpu.reciprocal %15 {approx = true} : vector<8x512xf32> -> vector<8x512xf32>
    %cst_9 = arith.constant 1.06140542 : f32
    %17 = vector.broadcast %cst_9 : f32 to vector<8x512xf32>
    %18 = arith.mulf %17, %16 : vector<8x512xf32>
    %cst_10 = arith.constant -1.45315206 : f32
    %19 = vector.broadcast %cst_10 : f32 to vector<8x512xf32>
    %20 = arith.addf %18, %19 : vector<8x512xf32>
    %21 = arith.mulf %20, %16 : vector<8x512xf32>
    %cst_11 = arith.constant 1.42141378 : f32
    %22 = vector.broadcast %cst_11 : f32 to vector<8x512xf32>
    %23 = arith.addf %21, %22 : vector<8x512xf32>
    %24 = arith.mulf %23, %16 : vector<8x512xf32>
    %cst_12 = arith.constant -0.284496725 : f32
    %25 = vector.broadcast %cst_12 : f32 to vector<8x512xf32>
    %26 = arith.addf %24, %25 : vector<8x512xf32>
    %27 = arith.mulf %26, %16 : vector<8x512xf32>
    %cst_13 = arith.constant 0.254829586 : f32
    %28 = vector.broadcast %cst_13 : f32 to vector<8x512xf32>
    %29 = arith.addf %27, %28 : vector<8x512xf32>
    %30 = arith.mulf %29, %16 : vector<8x512xf32>
    %cst_14 = arith.constant 0.000000e+00 : f32
    %31 = vector.broadcast %cst_14 : f32 to vector<8x512xf32>
    %32 = arith.subf %31, %11 : vector<8x512xf32>
    %33 = arith.mulf %32, %11 : vector<8x512xf32>
    %34 = math.exp %33 : vector<8x512xf32>
    %35 = arith.mulf %30, %34 : vector<8x512xf32>
    %cst_15 = arith.constant 1.000000e+00 : f32
    %36 = vector.broadcast %cst_15 : f32 to vector<8x512xf32>
    %37 = arith.subf %36, %35 : vector<8x512xf32>
    %cst_16 = arith.constant 0.000000e+00 : f32
    %38 = vector.broadcast %cst_16 : f32 to vector<8x512xf32>
    %39 = arith.cmpf oge, %10, %38 : vector<8x512xf32>
    %cst_17 = arith.constant 0.000000e+00 : f32
    %40 = vector.broadcast %cst_17 : f32 to vector<8x512xf32>
    %41 = arith.subf %40, %37 : vector<8x512xf32>
    %42 = arith.select %39, %37, %41 : vector<8x512xi1>, vector<8x512xf32>
    %cst_18 = arith.constant 1.000000e+00 : f32
    %43 = vector.broadcast %cst_18 : f32 to vector<8x512xf32>
    %44 = arith.addf %43, %42 : vector<8x512xf32>
    %45 = arith.mulf %8, %44 : vector<8x512xf32>
    %46 = arith.truncf %45 : vector<8x512xf32> to vector<8x512xbf16>
    %c0_19 = arith.constant 0 : index
    %c0_20 = arith.constant 0 : index
    %47 = vector.load %arg4[%c0_19, %c0_20] : memref<512x256xbf16, #tpu.memory_space<vmem>>, vector<512x256xbf16>
    %cst_21 = arith.constant dense<0.000000e+00> : vector<8x256xf32>
    %48 = tpu.matmul %46, %47, %cst_21 {dimension_numbers = #tpu.dot_dimension_numbers<[1], [0], [0], [1], [0, 0, 1, 1], [], []>} : vector<8x512xbf16>, vector<512x256xbf16>, vector<8x256xf32> -> vector<8x256xf32>
    %c0_22 = arith.constant 0 : index
    %c0_23 = arith.constant 0 : index
    %49 = vector.load %arg5[%c0_22, %c0_23] : memref<1x256xf32, #tpu.memory_space<vmem>>, vector<1x256xf32>
    %50 = vector.broadcast %49 : vector<1x256xf32> to vector<8x256xf32>
    %51 = arith.addf %48, %50 : vector<8x256xf32>
    %cst_24 = arith.constant 5.000000e-01 : f32
    %52 = vector.broadcast %cst_24 : f32 to vector<8x256xf32>
    %53 = arith.mulf %52, %51 : vector<8x256xf32>
    %cst_25 = arith.constant 0.707106769 : f32
    %54 = vector.broadcast %cst_25 : f32 to vector<8x256xf32>
    %55 = arith.mulf %51, %54 : vector<8x256xf32>
    %56 = math.absf %55 : vector<8x256xf32>
    %cst_26 = arith.constant 0.327591091 : f32
    %57 = vector.broadcast %cst_26 : f32 to vector<8x256xf32>
    %58 = arith.mulf %57, %56 : vector<8x256xf32>
    %cst_27 = arith.constant 1.000000e+00 : f32
    %59 = vector.broadcast %cst_27 : f32 to vector<8x256xf32>
    %60 = arith.addf %59, %58 : vector<8x256xf32>
    %61 = tpu.reciprocal %60 {approx = true} : vector<8x256xf32> -> vector<8x256xf32>
    %cst_28 = arith.constant 1.06140542 : f32
    %62 = vector.broadcast %cst_28 : f32 to vector<8x256xf32>
    %63 = arith.mulf %62, %61 : vector<8x256xf32>
    %cst_29 = arith.constant -1.45315206 : f32
    %64 = vector.broadcast %cst_29 : f32 to vector<8x256xf32>
    %65 = arith.addf %63, %64 : vector<8x256xf32>
    %66 = arith.mulf %65, %61 : vector<8x256xf32>
    %cst_30 = arith.constant 1.42141378 : f32
    %67 = vector.broadcast %cst_30 : f32 to vector<8x256xf32>
    %68 = arith.addf %66, %67 : vector<8x256xf32>
    %69 = arith.mulf %68, %61 : vector<8x256xf32>
    %cst_31 = arith.constant -0.284496725 : f32
    %70 = vector.broadcast %cst_31 : f32 to vector<8x256xf32>
    %71 = arith.addf %69, %70 : vector<8x256xf32>
    %72 = arith.mulf %71, %61 : vector<8x256xf32>
    %cst_32 = arith.constant 0.254829586 : f32
    %73 = vector.broadcast %cst_32 : f32 to vector<8x256xf32>
    %74 = arith.addf %72, %73 : vector<8x256xf32>
    %75 = arith.mulf %74, %61 : vector<8x256xf32>
    %cst_33 = arith.constant 0.000000e+00 : f32
    %76 = vector.broadcast %cst_33 : f32 to vector<8x256xf32>
    %77 = arith.subf %76, %56 : vector<8x256xf32>
    %78 = arith.mulf %77, %56 : vector<8x256xf32>
    %79 = math.exp %78 : vector<8x256xf32>
    %80 = arith.mulf %75, %79 : vector<8x256xf32>
    %cst_34 = arith.constant 1.000000e+00 : f32
    %81 = vector.broadcast %cst_34 : f32 to vector<8x256xf32>
    %82 = arith.subf %81, %80 : vector<8x256xf32>
    %cst_35 = arith.constant 0.000000e+00 : f32
    %83 = vector.broadcast %cst_35 : f32 to vector<8x256xf32>
    %84 = arith.cmpf oge, %55, %83 : vector<8x256xf32>
    %cst_36 = arith.constant 0.000000e+00 : f32
    %85 = vector.broadcast %cst_36 : f32 to vector<8x256xf32>
    %86 = arith.subf %85, %82 : vector<8x256xf32>
    %87 = arith.select %84, %82, %86 : vector<8x256xi1>, vector<8x256xf32>
    %cst_37 = arith.constant 1.000000e+00 : f32
    %88 = vector.broadcast %cst_37 : f32 to vector<8x256xf32>
    %89 = arith.addf %88, %87 : vector<8x256xf32>
    %90 = arith.mulf %53, %89 : vector<8x256xf32>
    %c0_38 = arith.constant 0 : index
    %c0_39 = arith.constant 0 : index
    %91 = vector.load %arg6[%c0_38, %c0_39] : memref<8x256xf32, #tpu.memory_space<vmem>>, vector<8x256xf32>
    tpu.vector_store %arg6[%c0_38, %c0_39], %90 {strides = array<i32>} : memref<8x256xf32, #tpu.memory_space<vmem>>, vector<8x256xf32>,
    return
  }
  func.func @transform_0(%arg0: i32) -> (i32, i32) {
    %c0_i32 = arith.constant 0 : i32
    %c0_i32_0 = arith.constant 0 : i32
    return %arg0, %c0_i32 : i32, i32
  }
  func.func @transform_1(%arg0: i32) -> (i32, i32) {
    %c0_i32 = arith.constant 0 : i32
    %c0_i32_0 = arith.constant 0 : i32
    %c0_i32_1 = arith.constant 0 : i32
    return %c0_i32, %c0_i32_0 : i32, i32
  }
  func.func @transform_2(%arg0: i32) -> (i32, i32) {
    %c0_i32 = arith.constant 0 : i32
    %c0_i32_0 = arith.constant 0 : i32
    %c0_i32_1 = arith.constant 0 : i32
    return %c0_i32, %c0_i32_0 : i32, i32
  }
  func.func @transform_3(%arg0: i32) -> (i32, i32) {
    %c0_i32 = arith.constant 0 : i32
    %c0_i32_0 = arith.constant 0 : i32
    %c0_i32_1 = arith.constant 0 : i32
    return %c0_i32, %c0_i32_0 : i32, i32
  }
  func.func @transform_4(%arg0: i32) -> (i32, i32) {
    %c0_i32 = arith.constant 0 : i32
    %c0_i32_0 = arith.constant 0 : i32
    %c0_i32_1 = arith.constant 0 : i32
    return %c0_i32, %c0_i32_0 : i32, i32
  }
  func.func @transform_5(%arg0: i32) -> (i32, i32) {
    %c0_i32 = arith.constant 0 : i32
    %c0_i32_0 = arith.constant 0 : i32
    return %arg0, %c0_i32 : i32, i32
  }
}

</mosaic_0001>

<bundles_post_ra>
// kernel: feed_forward.1
= control target key start
LH: loop header
LB: loop body
LE: loop exit
PB: predicated region body
PF: predicated region fallthrough
CT: control target
= control target key end

     0   :  { %10 = vsyncpa [#allocation3], 0  ;;  %s1686_s0 = inlined_call_operand.vmem [shape: f32[8,256], index: 0, kind: input, shape index: {}]   ;;  %s1687_s1 = inlined_call_operand.hbm [shape: bf16[256,512], index: 1, kind: input, shape index: {}]   ;;  %s1688_s2 = inlined_call_operand.vmem [shape: f32[1,512], index: 2, kind: input, shape index: {}]   ;;  %s1689_s3 = inlined_call_operand.hbm [shape: bf16[512,256], index: 3, kind: input, shape index: {}]   ;;  %s1690_s4 = inlined_call_operand.vmem [shape: f32[1,256], index: 4, kind: input, shape index: {}]   ;;  %s1691_s5 = inlined_call_operand.vmem [shape: f32[8,256], index: 5, kind: output, shape index: {}]  }
   0x1   :  { %11 = vsyncpa [#allocation5], 0  ;;  %s1580_s18 = smov [#allocation2]  }
   0x2   :  { %s19_s19 = sshll.u32 %s1580_s18, 4  ;;  %s20_s19 = int_to_ptr.vmem [resolvable:$true] %s19_s19 }
   0x3   :  { %s1544_s20 = scalar_lea.vmem %s20_s19, 8192  ;;  %p1549_p1 = scmp.lt.s32.totalorder %s20_s19, %s20_s19 }
   0x4   :  { %p1545_p0 = scmp.ne.s32.totalorder %s20_s19, %s1544_s20  ;;  %p1550_p2 = scmp.lt.s32.totalorder %s1544_s20, %s1544_s20 }
   0x6   :  { %p1551_p3 = por %p1550_p2, %p1549_p1 }
   0x8   :  { %p1552_p4 = pnand %p1551_p3, %p1545_p0 }
   0xa   :  { %1555 = shalt.err (!%p1552_p4)
}
   0xb   :  { %s1581_s21 = smov 256   ;;  %s1582_s22 = smov 16  }
   0xc   :  { %25 = dma.hbm_to_vmem [thread:$0]  %s1687_s1, 8192, %s20_s19, [#allocation3], %s1581_s21, %s1581_s21, %s1582_s22  }
   0xd   :  { %s1583_s25 = smov [#allocation4]  }
   0xe   :  { %s33_s26 = sshll.u32 %s1583_s25, 4  ;;  %s34_s26 = int_to_ptr.vmem [resolvable:$true] %s33_s26 }
   0xf   :  { %s1564_s27 = scalar_lea.vmem %s34_s26, 8192  ;;  %p1569_p6 = scmp.lt.s32.totalorder %s34_s26, %s34_s26 }
  0x10   :  { %p1565_p5 = scmp.ne.s32.totalorder %s34_s26, %s1564_s27  ;;  %p1570_p7 = scmp.lt.s32.totalorder %s1564_s27, %s1564_s27 }
  0x12   :  { %p1571_p8 = por %p1570_p7, %p1569_p6 }
  0x14   :  { %p1572_p9 = pnand %p1571_p8, %p1565_p5 }
  0x16   :  { %1575 = shalt.err (!%p1572_p9)
}
  0x17   :  { %s1584_s28 = smov 128   ;;  %s1585_s29 = smov 8  }
  0x18   :  { %39 = dma.hbm_to_vmem [thread:$0]  %s1689_s3, 8192, %s34_s26, [#allocation5], %s1584_s28, %s1584_s28, %s1585_s29  }
  0x19   :  { %1576 = dma.done.wait [#allocation3], 8192  }
  0x1a   :  { %1577 = vsyncadd [#allocation3], 4294959104 }
  0x1b   :  { %1578 = dma.done.wait [#allocation5], 8192  }
  0x1c   :  { %1579 = vsyncadd [#allocation5], 4294959104  ;;  %v1320_v0 = vld [vmem:[#allocation2 + $0xe4] ss:$16 sps:$4 sm:$0xff]   ;;  %v1322_v1 = vld [vmem:[#allocation2 + $0xec] ss:$16 sps:$4 sm:$0xff]  }
  0x1d   :  { %458 = vmatprep.subr.bf16.mxu0 %v1320_v0  ;;  %v1324_v2 = vld [vmem:[#allocation2 + $0xe0] ss:$16 sps:$4 sm:$0xff]   ;;  %v1325_v3 = vld [vmem:[#allocation2 + $0xe8] ss:$16 sps:$4 sm:$0xff]   ;;  %499 = vmatprep.subr.bf16.mxu1 %v1322_v1  ;;  %v1326_v4 = vld [vmem:[#allocation2 + $0xc4] ss:$16 sps:$4 sm:$0xff]  }
  0x1e   :  { %459 = vmatpush1.bf16.msra.mxu0 %v1324_v2  ;;  %500 = vmatpush1.bf16.msra.mxu1 %v1325_v3  ;;  %v1328_v5 = vld [vmem:[#allocation2 + $0xcc] ss:$16 sps:$4 sm:$0xff]   ;;  %v1330_v6 = vld [vmem:[#allocation2 + $0xc0] ss:$16 sps:$4 sm:$0xff]   ;;  %v1331_v7 = vld [vmem:[#allocation2 + $0xc8] ss:$16 sps:$4 sm:$0xff]  }
  0x1f   :  { %460 = vmatprep.subr.bf16.mxu0 %v1326_v4  ;;  %501 = vmatprep.subr.bf16.mxu1 %v1328_v5  ;;  %v1332_v8 = vld [vmem:[#allocation2 + $0xa4] ss:$16 sps:$4 sm:$0xff]   ;;  %v1334_v9 = vld [vmem:[#allocation2 + $0xac] ss:$16 sps:$4 sm:$0xff]   ;;  %v1336_v10 = vld [vmem:[#allocation2 + $0xa0] ss:$16 sps:$4 sm:$0xff]  }
  0x20   :  { %v1337_v11 = vld [vmem:[#allocation2 + $0xa8] ss:$16 sps:$4 sm:$0xff]   ;;  %v1338_v12 = vld [vmem:[#allocation2 + $0x84] ss:$16 sps:$4 sm:$0xff]   ;;  %v1340_v13 = vld [vmem:[#allocation2 + $0x8c] ss:$16 sps:$4 sm:$0xff]  }
  0x21   :  { %v1342_v14 = vld [vmem:[#allocation2 + $0x80] ss:$16 sps:$4 sm:$0xff]   ;;  %v1343_v15 = vld [vmem:[#allocation2 + $0x88] ss:$16 sps:$4 sm:$0xff]   ;;  %v1344_v16 = vld [vmem:[#allocation2 + $0x64] ss:$16 sps:$4 sm:$0xff]  }
  0x22   :  { %461 = vmatpush1.bf16.msra.mxu0 %v1330_v6  ;;  %502 = vmatpush1.bf16.msra.mxu1 %v1331_v7  ;;  %v1346_v17 = vld [vmem:[#allocation2 + $0x6c] ss:$16 sps:$4 sm:$0xff]   ;;  %v1348_v18 = vld [vmem:[#allocation2 + $0x60] ss:$16 sps:$4 sm:$0xff]   ;;  %v1349_v19 = vld [vmem:[#allocation2 + $0x68] ss:$16 sps:$4 sm:$0xff]  }
  0x23   :  { %462 = vmatprep.subr.bf16.mxu0 %v1332_v8  ;;  %503 = vmatprep.subr.bf16.mxu1 %v1334_v9  ;;  %v1350_v20 = vld [vmem:[#allocation2 + $0x44] ss:$16 sps:$4 sm:$0xff]   ;;  %v1352_v21 = vld [vmem:[#allocation2 + $0x4c] ss:$16 sps:$4 sm:$0xff]   ;;  %v1354_v22 = vld [vmem:[#allocation2 + $0x40] ss:$16 sps:$4 sm:$0xff]  }
  0x24   :  { %v1355_v23 = vld [vmem:[#allocation2 + $0x48] ss:$16 sps:$4 sm:$0xff]   ;;  %v1356_v24 = vld [vmem:[#allocation2 + $0x24] ss:$16 sps:$4 sm:$0xff]   ;;  %v1358_v25 = vld [vmem:[#allocation2 + $0x2c] ss:$16 sps:$4 sm:$0xff]  }
  0x25   :  { %v1360_v26 = vld [vmem:[#allocation2 + $0x20] ss:$16 sps:$4 sm:$0xff]   ;;  %v1361_v27 = vld [vmem:[#allocation2 + $0x28] ss:$16 sps:$4 sm:$0xff]   ;;  %v1362_v28 = vld [vmem:[#allocation2 + $0x4] ss:$16 sps:$4 sm:$0xff]  }
  0x26   :  { %463 = vmatpush1.bf16.msra.mxu0 %v1336_v10  ;;  %504 = vmatpush1.bf16.msra.mxu1 %v1337_v11  ;;  %v1364_v29 = vld [vmem:[#allocation2 + $0xc] ss:$16 sps:$4 sm:$0xff]   ;;  %v1366_v30 = vld [vmem:[#allocation2] ss:$16 sps:$4 sm:$0xff]   ;;  %v1367_v31 = vld [vmem:[#allocation2 + $0x8] ss:$16 sps:$4 sm:$0xff]  }
  0x27   :  { %464 = vmatprep.subr.bf16.mxu0 %v1338_v12  ;;  %505 = vmatprep.subr.bf16.mxu1 %v1340_v13  ;;  %v1368_v32 = vld [vmem:[#allocation2 + $0x1e4] ss:$16 sps:$4 sm:$0xff]   ;;  %v1370_v33 = vld [vmem:[#allocation2 + $0x1ec] ss:$16 sps:$4 sm:$0xff]   ;;  %v1372_v34 = vld [vmem:[#allocation2 + $0x1e0] ss:$16 sps:$4 sm:$0xff]  }
  0x28   :  { %v1373_v35 = vld [vmem:[#allocation2 + $0x1e8] ss:$16 sps:$4 sm:$0xff]   ;;  %v1374_v36 = vld [vmem:[#allocation2 + $0x1c4] ss:$16 sps:$4 sm:$0xff]   ;;  %v1376_v37 = vld [vmem:[#allocation2 + $0x1cc] ss:$16 sps:$4 sm:$0xff]  }
  0x29   :  { %v1378_v38 = vld [vmem:[#allocation2 + $0x1c0] ss:$16 sps:$4 sm:$0xff]   ;;  %v1379_v39 = vld [vmem:[#allocation2 + $0x1c8] ss:$16 sps:$4 sm:$0xff]   ;;  %v1380_v40 = vld [vmem:[#allocation2 + $0x1a4] ss:$16 sps:$4 sm:$0xff]  }
  0x2a   :  { %465 = vmatpush1.bf16.msra.mxu0 %v1342_v14  ;;  %506 = vmatpush1.bf16.msra.mxu1 %v1343_v15  ;;  %v1382_v41 = vld [vmem:[#allocation2 + $0x1ac] ss:$16 sps:$4 sm:$0xff]   ;;  %v1384_v42 = vld [vmem:[#allocation2 + $0x1a0] ss:$16 sps:$4 sm:$0xff]   ;;  %v1385_v43 = vld [vmem:[#allocation2 + $0x1a8] ss:$16 sps:$4 sm:$0xff]  }
  0x2b   :  { %466 = vmatprep.subr.bf16.mxu0 %v1344_v16  ;;  %507 = vmatprep.subr.bf16.mxu1 %v1346_v17  ;;  %v1386_v44 = vld [vmem:[#allocation2 + $0x184] ss:$16 sps:$4 sm:$0xff]   ;;  %v1388_v45 = vld [vmem:[#allocation2 + $0x18c] ss:$16 sps:$4 sm:$0xff]   ;;  %v1390_v48 = vld [vmem:[#allocation2 + $0x180] ss:$16 sps:$4 sm:$0xff]  }
  0x2c   :  { %v49_v46 = vld [vmem:[%s1686_s0 + $0x8] sm:$0xff]  ;;  %v1392_v50 = vld [vmem:[#allocation2 + $0x164] ss:$16 sps:$4 sm:$0xff]   ;;  %v1396_v52 = vld [vmem:[#allocation2 + $0x160] ss:$16 sps:$4 sm:$0xff]  }
  0x2d   :  { %v51_v47 = vpack.c.bf16 %v49_v46, %v49_v46  ;;  %v1391_v49 = vld [vmem:[#allocation2 + $0x188] ss:$16 sps:$4 sm:$0xff]   ;;  %v1394_v51 = vld [vmem:[#allocation2 + $0x16c] ss:$16 sps:$4 sm:$0xff]   ;;  %v1398_v54 = vld [vmem:[#allocation2 + $0x144] ss:$16 sps:$4 sm:$0xff]  }
  0x2e   :  { %467 = vmatpush1.bf16.msra.mxu0 %v1348_v18  ;;  %508 = vmatpush1.bf16.msra.mxu1 %v1349_v19  ;;  %v1397_v53 = vld [vmem:[#allocation2 + $0x168] ss:$16 sps:$4 sm:$0xff]   ;;  %v1400_v55 = vld [vmem:[#allocation2 + $0x14c] ss:$16 sps:$4 sm:$0xff]   ;;  %v1402_v56 = vld [vmem:[#allocation2 + $0x140] ss:$16 sps:$4 sm:$0xff]  }
  0x2f   :  { %468 = vmatprep.subr.bf16.mxu0 %v1350_v20  ;;  %509 = vmatprep.subr.bf16.mxu1 %v1352_v21  ;;  %v1403_v57 = vld [vmem:[#allocation2 + $0x148] ss:$16 sps:$4 sm:$0xff]   ;;  %v1404_v58 = vld [vmem:[#allocation2 + $0x124] ss:$16 sps:$4 sm:$0xff]   ;;  %v1406_v59 = vld [vmem:[#allocation2 + $0x12c] ss:$16 sps:$4 sm:$0xff]  }
  0x30   :  { %490 = vmatprep.mubr.bf16.mxu0 %v51_v47  ;;  %531 = vmatprep.mubr.bf16.mxu1 %v51_v47  ;;  %v1408_v60 = vld [vmem:[#allocation2 + $0x120] ss:$16 sps:$4 sm:$0xff]   ;;  %v1409_v61 = vld [vmem:[#allocation2 + $0x128] ss:$16 sps:$4 sm:$0xff]   ;;  %v1410_v62 = vld [vmem:[#allocation2 + $0x104] ss:$16 sps:$4 sm:$0xff]  }
  0x31   :  { %v1412_v63 = vld [vmem:[#allocation2 + $0x10c] ss:$16 sps:$4 sm:$0xff]   ;;  %v1414_v0 = vld [vmem:[#allocation2 + $0x100] ss:$16 sps:$4 sm:$0xff]   ;;  %v1415_v1 = vld [vmem:[#allocation2 + $0x108] ss:$16 sps:$4 sm:$0xff]  }
  0x32   :  { %469 = vmatpush1.bf16.msra.mxu0 %v1354_v22  ;;  %510 = vmatpush1.bf16.msra.mxu1 %v1355_v23  ;;  %v48_v2 = vld [vmem:[%s1686_s0] sm:$0xff]  ;;  %v1418_v3 = vld [vmem:[#allocation4 + $0x74] ss:$8 sps:$4 sm:$0xff]   ;;  %v1416_v5 = vld [vmem:[#allocation4 + $0x70] ss:$8 sps:$4 sm:$0xff]  }
  0x33   :  { %470 = vmatprep.subr.bf16.mxu0 %v1356_v24  ;;  %511 = vmatprep.subr.bf16.mxu1 %v1358_v25  ;;  %v1421_v4 = vld [vmem:[#allocation4 + $0x174] ss:$8 sps:$4 sm:$0xff]   ;;  %v1419_v6 = vld [vmem:[#allocation4 + $0x170] ss:$8 sps:$4 sm:$0xff]   ;;  %v50_v7 = vpack.c.bf16 %v48_v2, %v48_v2  ;;  %v1424_v8 = vld [vmem:[#allocation4 + $0x64] ss:$8 sps:$4 sm:$0xff]  }
  0x34   :  { %v1427_v9 = vld [vmem:[#allocation4 + $0x164] ss:$8 sps:$4 sm:$0xff]   ;;  %v1422_v10 = vld [vmem:[#allocation4 + $0x60] ss:$8 sps:$4 sm:$0xff]   ;;  %v1430_v12 = vld [vmem:[#allocation4 + $0x54] ss:$8 sps:$4 sm:$0xff]  }
  0x35   :  { %v1425_v11 = vld [vmem:[#allocation4 + $0x160] ss:$8 sps:$4 sm:$0xff]   ;;  %v1433_v13 = vld [vmem:[#allocation4 + $0x154] ss:$8 sps:$4 sm:$0xff]   ;;  %v1428_v14 = vld [vmem:[#allocation4 + $0x50] ss:$8 sps:$4 sm:$0xff]  }
  0x36   :  { %471 = vmatpush1.bf16.msra.mxu0 %v1360_v26  ;;  %512 = vmatpush1.bf16.msra.mxu1 %v1361_v27  ;;  %v1431_v15 = vld [vmem:[#allocation4 + $0x150] ss:$8 sps:$4 sm:$0xff]   ;;  %v1436_v16 = vld [vmem:[#allocation4 + $0x44] ss:$8 sps:$4 sm:$0xff]   ;;  %v1434_v18 = vld [vmem:[#allocation4 + $0x40] ss:$8 sps:$4 sm:$0xff]  }
  0x37   :  { %472 = vmatprep.subr.bf16.mxu0 %v1362_v28  ;;  %513 = vmatprep.subr.bf16.mxu1 %v1364_v29  ;;  %v1439_v17 = vld [vmem:[#allocation4 + $0x144] ss:$8 sps:$4 sm:$0xff]   ;;  %v1437_v19 = vld [vmem:[#allocation4 + $0x140] ss:$8 sps:$4 sm:$0xff]   ;;  %v1442_v20 = vld [vmem:[#allocation4 + $0x34] ss:$8 sps:$4 sm:$0xff]  }
  0x38   :  { %v1445_v21 = vld [vmem:[#allocation4 + $0x134] ss:$8 sps:$4 sm:$0xff]   ;;  %v1440_v22 = vld [vmem:[#allocation4 + $0x30] ss:$8 sps:$4 sm:$0xff]   ;;  %v1448_v24 = vld [vmem:[#allocation4 + $0x24] ss:$8 sps:$4 sm:$0xff]  }
  0x39   :  { %v1443_v23 = vld [vmem:[#allocation4 + $0x130] ss:$8 sps:$4 sm:$0xff]   ;;  %v1451_v25 = vld [vmem:[#allocation4 + $0x124] ss:$8 sps:$4 sm:$0xff]   ;;  %v1446_v26 = vld [vmem:[#allocation4 + $0x20] ss:$8 sps:$4 sm:$0xff]  }
  0x3a   :  { %473 = vmatpush1.bf16.msra.mxu0 %v1366_v30  ;;  %514 = vmatpush1.bf16.msra.mxu1 %v1367_v31  ;;  %v1449_v27 = vld [vmem:[#allocation4 + $0x120] ss:$8 sps:$4 sm:$0xff]   ;;  %v1454_v28 = vld [vmem:[#allocation4 + $0x14] ss:$8 sps:$4 sm:$0xff]   ;;  %v1452_v30 = vld [vmem:[#allocation4 + $0x10] ss:$8 sps:$4 sm:$0xff]  }
  0x3b   :  { %474 = vmatprep.subr.bf16.mxu0 %v1368_v32  ;;  %515 = vmatprep.subr.bf16.mxu1 %v1370_v33  ;;  %v1457_v29 = vld [vmem:[#allocation4 + $0x114] ss:$8 sps:$4 sm:$0xff]   ;;  %v1455_v31 = vld [vmem:[#allocation4 + $0x110] ss:$8 sps:$4 sm:$0xff]   ;;  %v1460_v32 = vld [vmem:[#allocation4 + $0x4] ss:$8 sps:$4 sm:$0xff]  }
  0x3c   :  { %v1463_v33 = vld [vmem:[#allocation4 + $0x104] ss:$8 sps:$4 sm:$0xff]   ;;  %v1476_v46 = vld [vmem:[#allocation4 + $0xd0] ss:$8 sps:$4 sm:$0xff]   ;;  %v1509_v2 = vld [vmem:[#allocation4 + $0x180] ss:$8 sps:$4 sm:$0xff]  }
  0x3d   :  { %v1479_v47 = vld [vmem:[#allocation4 + $0x1d0] ss:$8 sps:$4 sm:$0xff]  }
  0x3e   :  { %475 = vmatpush2.bf16.msra.mxu0 %v1372_v34  ;;  %516 = vmatpush2.bf16.msra.mxu1 %v1373_v35  ;;  %v1458_v34 = vld [vmem:[#allocation4] ss:$8 sps:$4 sm:$0xff]  }
  0x3f   :  { %476 = vmatprep.subr.bf16.mxu0 %v1374_v36  ;;  %517 = vmatprep.subr.bf16.mxu1 %v1376_v37  ;;  %v1461_v35 = vld [vmem:[#allocation4 + $0x100] ss:$8 sps:$4 sm:$0xff]   ;;  %v1466_v36 = vld [vmem:[#allocation4 + $0xf4] ss:$8 sps:$4 sm:$0xff]  }
  0x40   :  { %v1469_v37 = vld [vmem:[#allocation4 + $0x1f4] ss:$8 sps:$4 sm:$0xff]  }
  0x42   :  { %477 = vmatpush2.bf16.msra.mxu0 %v1378_v38  ;;  %518 = vmatpush2.bf16.msra.mxu1 %v1379_v39  ;;  %v1464_v38 = vld [vmem:[#allocation4 + $0xf0] ss:$8 sps:$4 sm:$0xff]  }
  0x43   :  { %478 = vmatprep.subr.bf16.mxu0 %v1380_v40  ;;  %519 = vmatprep.subr.bf16.mxu1 %v1382_v41  ;;  %v1467_v39 = vld [vmem:[#allocation4 + $0x1f0] ss:$8 sps:$4 sm:$0xff]   ;;  %v1472_v40 = vld [vmem:[#allocation4 + $0xe4] ss:$8 sps:$4 sm:$0xff]  }
  0x44   :  { %v1475_v41 = vld [vmem:[#allocation4 + $0x1e4] ss:$8 sps:$4 sm:$0xff]  }
  0x46   :  { %479 = vmatpush2.bf16.msra.mxu0 %v1384_v42  ;;  %520 = vmatpush2.bf16.msra.mxu1 %v1385_v43  ;;  %v1470_v42 = vld [vmem:[#allocation4 + $0xe0] ss:$8 sps:$4 sm:$0xff]  }
  0x47   :  { %480 = vmatprep.subr.bf16.mxu0 %v1386_v44  ;;  %521 = vmatprep.subr.bf16.mxu1 %v1388_v45  ;;  %v1473_v43 = vld [vmem:[#allocation4 + $0x1e0] ss:$8 sps:$4 sm:$0xff]   ;;  %v1478_v44 = vld [vmem:[#allocation4 + $0xd4] ss:$8 sps:$4 sm:$0xff]  }
  0x48   :  { %v1481_v45 = vld [vmem:[#allocation4 + $0x1d4] ss:$8 sps:$4 sm:$0xff]  }
  0x4a   :  { %481 = vmatpush2.bf16.msra.mxu0 %v1390_v48  ;;  %522 = vmatpush2.bf16.msra.mxu1 %v1391_v49  ;;  %v1484_v48 = vld [vmem:[#allocation4 + $0xc4] ss:$8 sps:$4 sm:$0xff]  }
  0x4b   :  { %482 = vmatprep.subr.bf16.mxu0 %v1392_v50  ;;  %523 = vmatprep.subr.bf16.mxu1 %v1394_v51  ;;  %v1487_v49 = vld [vmem:[#allocation4 + $0x1c4] ss:$8 sps:$4 sm:$0xff]   ;;  %v1482_v50 = vld [vmem:[#allocation4 + $0xc0] ss:$8 sps:$4 sm:$0xff]  }
  0x4c   :  { %v1485_v51 = vld [vmem:[#allocation4 + $0x1c0] ss:$8 sps:$4 sm:$0xff]  }
  0x4e   :  { %483 = vmatpush2.bf16.msra.mxu0 %v1396_v52  ;;  %524 = vmatpush2.bf16.msra.mxu1 %v1397_v53  ;;  %v1490_v52 = vld [vmem:[#allocation4 + $0xb4] ss:$8 sps:$4 sm:$0xff]  }
  0x4f   :  { %484 = vmatprep.subr.bf16.mxu0 %v1398_v54  ;;  %525 = vmatprep.subr.bf16.mxu1 %v1400_v55  ;;  %v1493_v53 = vld [vmem:[#allocation4 + $0x1b4] ss:$8 sps:$4 sm:$0xff]   ;;  %v1488_v54 = vld [vmem:[#allocation4 + $0xb0] ss:$8 sps:$4 sm:$0xff]  }
  0x50   :  { %v1491_v55 = vld [vmem:[#allocation4 + $0x1b0] ss:$8 sps:$4 sm:$0xff]  }
  0x52   :  { %485 = vmatpush2.bf16.msra.mxu0 %v1402_v56  ;;  %526 = vmatpush2.bf16.msra.mxu1 %v1403_v57  ;;  %v1496_v56 = vld [vmem:[#allocation4 + $0xa4] ss:$8 sps:$4 sm:$0xff]  }
  0x53   :  { %486 = vmatprep.subr.bf16.mxu0 %v1404_v58  ;;  %527 = vmatprep.subr.bf16.mxu1 %v1406_v59  ;;  %v1499_v57 = vld [vmem:[#allocation4 + $0x1a4] ss:$8 sps:$4 sm:$0xff]   ;;  %v1494_v58 = vld [vmem:[#allocation4 + $0xa0] ss:$8 sps:$4 sm:$0xff]  }
  0x54   :  { %v1497_v59 = vld [vmem:[#allocation4 + $0x1a0] ss:$8 sps:$4 sm:$0xff]  }
  0x56   :  { %487 = vmatpush2.bf16.msra.mxu0 %v1408_v60  ;;  %528 = vmatpush2.bf16.msra.mxu1 %v1409_v61  ;;  %v1502_v60 = vld [vmem:[#allocation4 + $0x94] ss:$8 sps:$4 sm:$0xff]  }
  0x57   :  { %488 = vmatprep.subr.bf16.mxu0 %v1410_v62  ;;  %529 = vmatprep.subr.bf16.mxu1 %v1412_v63  ;;  %v1505_v61 = vld [vmem:[#allocation4 + $0x194] ss:$8 sps:$4 sm:$0xff]   ;;  %v1500_v62 = vld [vmem:[#allocation4 + $0x90] ss:$8 sps:$4 sm:$0xff]  }
  0x58   :  { %v1503_v63 = vld [vmem:[#allocation4 + $0x190] ss:$8 sps:$4 sm:$0xff]  }
  0x5a   :  { %489 = vmatpush2.bf16.msra.mxu0 %v1414_v0  ;;  %530 = vmatpush2.bf16.msra.mxu1 %v1415_v1  ;;  %v1508_v0 = vld [vmem:[#allocation4 + $0x84] ss:$8 sps:$4 sm:$0xff]   ;;  %v1506_v1 = vld [vmem:[#allocation4 + $0x80] ss:$8 sps:$4 sm:$0xff]  }
  0x5b   :  { %1044 = vmatprep.subr.bf16.mxu0 %v1418_v3  ;;  %1085 = vmatprep.subr.bf16.mxu1 %v1421_v4  ;;  %v1511_v3 = vld [vmem:[#allocation4 + $0x184] ss:$8 sps:$4 sm:$0xff]   ;;  %v118_v4 = vlaneseq }
  0x5d   :  { %491 = vmatmul.mubr.bf16.vlgmr.msra.gmra.mxu0 %v50_v7  ;;  %532 = vmatmul.mubr.bf16.vlgmr.msra.gmra.mxu1 %v50_v7 }
  0x5e   :  { %1045 = vmatpush1.bf16.msra.mxu0 %v1416_v5  ;;  %1086 = vmatpush1.bf16.msra.mxu1 %v1419_v6  ;;  %v1628_v5 = vshrl.u32 %v118_v4, 7 }
  0x5f   :  { %1046 = vmatprep.subr.bf16.mxu0 %v1424_v8  ;;  %1087 = vmatprep.subr.bf16.mxu1 %v1427_v9  ;;  %v116_v8 = vld [vmem:[%s1688_s2] sm:$0xf] }
  0x60   :  { %v120_v6 = vsub.s32 0, %v1628_v5  ;;  %v128_v7 = vsub.s32 2, %v1628_v5  ;;  %v124_v9 = vsub.s32 1, %v1628_v5 }
  0x62   :  { %1047 = vmatpush1.bf16.msra.mxu0 %v1422_v10  ;;  %1088 = vmatpush1.bf16.msra.mxu1 %v1425_v11  ;;  %v132_v10 = vsub.s32 3, %v1628_v5  ;;  %v121_v11 = vrot.slane %v116_v8, %v120_v6 }
  0x63   :  { %1048 = vmatprep.subr.bf16.mxu0 %v1430_v12  ;;  %1089 = vmatprep.subr.bf16.mxu1 %v1433_v13  ;;  %v129_v12 = vrot.slane %v116_v8, %v128_v7 }
  0x66   :  { %1049 = vmatpush1.bf16.msra.mxu0 %v1428_v14  ;;  %1090 = vmatpush1.bf16.msra.mxu1 %v1431_v15  ;;  %v125_v15 = vrot.slane %v116_v8, %v124_v9 }
  0x67   :  { %1050 = vmatprep.subr.bf16.mxu0 %v1436_v16  ;;  %1091 = vmatprep.subr.bf16.mxu1 %v1439_v17  ;;  %v133_v16 = vrot.slane %v116_v8, %v132_v10 }
  0x6a   :  { %1051 = vmatpush1.bf16.msra.mxu0 %v1434_v18  ;;  %1092 = vmatpush1.bf16.msra.mxu1 %v1437_v19 }
  0x6b   :  { %1052 = vmatprep.subr.bf16.mxu0 %v1442_v20  ;;  %1093 = vmatprep.subr.bf16.mxu1 %v1445_v21 }
  0x6e   :  { %1053 = vmatpush1.bf16.msra.mxu0 %v1440_v22  ;;  %1094 = vmatpush1.bf16.msra.mxu1 %v1443_v23 }
  0x6f   :  { %1054 = vmatprep.subr.bf16.mxu0 %v1448_v24  ;;  %1095 = vmatprep.subr.bf16.mxu1 %v1451_v25 }
  0x72   :  { %1055 = vmatpush1.bf16.msra.mxu0 %v1446_v26  ;;  %1096 = vmatpush1.bf16.msra.mxu1 %v1449_v27 }
  0x73   :  { %1056 = vmatprep.subr.bf16.mxu0 %v1454_v28  ;;  %1097 = vmatprep.subr.bf16.mxu1 %v1457_v29 }
  0x76   :  { %1057 = vmatpush1.bf16.msra.mxu0 %v1452_v30  ;;  %1098 = vmatpush1.bf16.msra.mxu1 %v1455_v31 }
  0x77   :  { %1058 = vmatprep.subr.bf16.mxu0 %v1460_v32  ;;  %1099 = vmatprep.subr.bf16.mxu1 %v1463_v33 }
  0x7a   :  { %1059 = vmatpush1.bf16.msra.mxu0 %v1458_v34  ;;  %1100 = vmatpush1.bf16.msra.mxu1 %v1461_v35 }
  0x7b   :  { %1060 = vmatprep.subr.bf16.mxu0 %v1466_v36  ;;  %1101 = vmatprep.subr.bf16.mxu1 %v1469_v37 }
  0x7e   :  { %1061 = vmatpush2.bf16.msra.mxu0 %v1464_v38  ;;  %1102 = vmatpush2.bf16.msra.mxu1 %v1467_v39 }
  0x7f   :  { %1062 = vmatprep.subr.bf16.mxu0 %v1472_v40  ;;  %1103 = vmatprep.subr.bf16.mxu1 %v1475_v41 }
  0x82   :  { %1063 = vmatpush2.bf16.msra.mxu0 %v1470_v42  ;;  %1104 = vmatpush2.bf16.msra.mxu1 %v1473_v43 }
  0x83   :  { %1064 = vmatprep.subr.bf16.mxu0 %v1478_v44  ;;  %1105 = vmatprep.subr.bf16.mxu1 %v1481_v45 }
  0x86   :  { %1065 = vmatpush2.bf16.msra.mxu0 %v1476_v46  ;;  %1106 = vmatpush2.bf16.msra.mxu1 %v1479_v47 }
  0x87   :  { %1066 = vmatprep.subr.bf16.mxu0 %v1484_v48  ;;  %1107 = vmatprep.subr.bf16.mxu1 %v1487_v49 }
  0x8a   :  { %1067 = vmatpush2.bf16.msra.mxu0 %v1482_v50  ;;  %1108 = vmatpush2.bf16.msra.mxu1 %v1485_v51 }
  0x8b   :  { %1068 = vmatprep.subr.bf16.mxu0 %v1490_v52  ;;  %1109 = vmatprep.subr.bf16.mxu1 %v1493_v53 }
  0x8e   :  { %1069 = vmatpush2.bf16.msra.mxu0 %v1488_v54  ;;  %1110 = vmatpush2.bf16.msra.mxu1 %v1491_v55 }
  0x8f   :  { %1070 = vmatprep.subr.bf16.mxu0 %v1496_v56  ;;  %1111 = vmatprep.subr.bf16.mxu1 %v1499_v57 }
  0x92   :  { %1071 = vmatpush2.bf16.msra.mxu0 %v1494_v58  ;;  %1112 = vmatpush2.bf16.msra.mxu1 %v1497_v59 }
  0x93   :  { %1072 = vmatprep.subr.bf16.mxu0 %v1502_v60  ;;  %1113 = vmatprep.subr.bf16.mxu1 %v1505_v61 }
  0x96   :  { %1073 = vmatpush2.bf16.msra.mxu0 %v1500_v62  ;;  %1114 = vmatpush2.bf16.msra.mxu1 %v1503_v63 }
  0x97   :  { %1074 = vmatprep.subr.bf16.mxu0 %v1508_v0  ;;  %1115 = vmatprep.subr.bf16.mxu1 %v1511_v3 }
  0x9a   :  { %1075 = vmatpush2.bf16.msra.mxu0 %v1506_v1  ;;  %1116 = vmatpush2.bf16.msra.mxu1 %v1509_v2 }
 0x11d   :  { %v492_v13 = vpop.f32.mrf.mxu0  ;;  %v533_v14 = vpop.f32.mrf.mxu1 }
 0x11e   :  { %v1641_v17 = vadd.f32 %v492_v13, %v121_v11  ;;  %v1643_v18 = vadd.f32 %v533_v14, %v129_v12 }
 0x11f   :  { %v494_v19 = vpop.f32.mrf.mxu0  ;;  %v535_v20 = vpop.f32.mrf.mxu1 }
 0x120   :  { %v1646_v21 = vmul.f32 0.70710677, %v1641_v17  ;;  %v1649_v22 = vmul.f32 0.70710677, %v1643_v18  ;;  %v1651_v23 = vadd.f32 %v494_v19, %v125_v15  ;;  %v1653_v24 = vadd.f32 %v535_v20, %v133_v16 }
 0x121   :  { %v496_v25 = vpop.f32.mrf.mxu0  ;;  %v537_v26 = vpop.f32.mrf.mxu1 }
 0x122   :  { %v548_v27 = vand.u32 2147483647, %v1646_v21  ;;  %v550_v28 = vand.u32 2147483647, %v1649_v22  ;;  %v1658_v29 = vmul.f32 0.70710677, %v1651_v23 }
 0x123   :  { %v1661_v30 = vmul.f32 0.70710677, %v1653_v24  ;;  %v497_v31 = vpop.f32.mrf.mxu0  ;;  %v538_v32 = vpop.f32.mrf.mxu1  ;;  %vm624_vm0 = vcmp.ge.f32.partialorder %v1646_v21, 0.0  ;;  %vm626_vm1 = vcmp.ge.f32.partialorder %v1649_v22, 0.0  ;;  %v542_v22 = vmul.f32 0.5, %v1643_v18 }
 0x124   :  { %v552_v33 = vmul.f32 0.3275911, %v548_v27  ;;  %v554_v34 = vmul.f32 0.3275911, %v550_v28  ;;  %v549_v35 = vand.u32 2147483647, %v1658_v29 }
 0x125   :  { %v551_v36 = vand.u32 2147483647, %v1661_v30  ;;  %v600_v43 = vsub.f32 0.0, %v548_v27  ;;  %v602_v44 = vsub.f32 0.0, %v550_v28  ;;  %vm625_vm2 = vcmp.ge.f32.partialorder %v1658_v29, 0.0 }
 0x126   :  { %v556_v37 = vadd.f32 1.0, %v552_v33  ;;  %v558_v38 = vadd.f32 1.0, %v554_v34  ;;  %v553_v39 = vmul.f32 0.3275911, %v549_v35  ;;  %v601_v46 = vsub.f32 0.0, %v549_v35 }
 0x127   :  { %v555_v40 = vmul.f32 0.3275911, %v551_v36  ;;  %v604_v45 = vmul.f32 %v600_v43, %v548_v27  ;;  %v606_v47 = vmul.f32 %v602_v44, %v550_v28  ;;  %v603_v48 = vsub.f32 0.0, %v551_v36 }
 0x128   :  { %1512 = vrcp.f32 %v556_v37  ;;  %v557_v41 = vadd.f32 1.0, %v553_v39  ;;  %v605_v53 = vmul.f32 %v601_v46, %v549_v35  ;;  %vm627_vm3 = vcmp.ge.f32.partialorder %v1661_v30, 0.0 }
 0x129   :  { %1514 = vrcp.f32 %v558_v38  ;;  %v559_v42 = vadd.f32 1.0, %v555_v40  ;;  %v608_v52 = vmul.f32 1.442695, %v604_v45  ;;  %v612_v55 = vmul.f32 1.442695, %v606_v47 }
 0x12a   :  { %1516 = vrcp.f32 %v557_v41  ;;  %v607_v56 = vmul.f32 %v603_v48, %v551_v36  ;;  %v610_v61 = vmul.f32 1.442695, %v605_v53 }
 0x12b   :  { %1518 = vrcp.f32 %v559_v42 }
 0x12c   :  { %1520 = vpow2.f32 %v608_v52  ;;  %v614_v1 = vmul.f32 1.442695, %v607_v56 }
 0x12d   :  { %1522 = vpow2.f32 %v612_v55 }
 0x12e   :  { %1524 = vpow2.f32 %v610_v61 }
 0x12f   :  { %1526 = vpow2.f32 %v614_v1 }
 0x135   :  { %v1513_v49 = vpop.eup %1512 }
 0x136   :  { %v1515_v50 = vpop.eup %1514  ;;  %v564_v51 = vmul.f32 1.0614054, %v1513_v49 }
 0x137   :  { %v566_v54 = vmul.f32 1.0614054, %v1515_v50  ;;  %v1517_v58 = vpop.eup %1516 }
 0x138   :  { %v568_v57 = vadd.f32 -1.4531521, %v564_v51  ;;  %v565_v62 = vmul.f32 1.0614054, %v1517_v58  ;;  %v1519_v63 = vpop.eup %1518 }
 0x139   :  { %v570_v59 = vadd.f32 -1.4531521, %v566_v54  ;;  %v567_v4 = vmul.f32 1.0614054, %v1519_v63  ;;  %v1521_v36 = vpop.eup %1520 }
 0x13a   :  { %v572_v60 = vmul.f32 %v1513_v49, %v568_v57  ;;  %v569_v3 = vadd.f32 -1.4531521, %v565_v62  ;;  %v1523_v38 = vpop.eup %1522 }
 0x13b   :  { %v574_v0 = vmul.f32 %v1515_v50, %v570_v59  ;;  %v571_v11 = vadd.f32 -1.4531521, %v567_v4  ;;  %v1525_v46 = vpop.eup %1524 }
 0x13c   :  { %v576_v2 = vadd.f32 1.4214138, %v572_v60  ;;  %v573_v10 = vmul.f32 %v1517_v58, %v569_v3  ;;  %v1527_v53 = vpop.eup %1526  ;;  %v543_v3 = vmul.f32 0.5, %v1653_v24 }
 0x13d   :  { %v578_v7 = vadd.f32 1.4214138, %v574_v0  ;;  %v575_v15 = vmul.f32 %v1519_v63, %v571_v11  ;;  %v541_v0 = vmul.f32 0.5, %v1651_v23  ;;  %v712_v23 = vld [vmem:[%s1690_s4] sm:$0x3] }
 0x13e   :  { %v580_v8 = vmul.f32 %v1513_v49, %v576_v2  ;;  %v577_v14 = vadd.f32 1.4214138, %v573_v10  ;;  %v717_v18 = vrot.slane %v712_v23, %v120_v6  ;;  %v721_v24 = vrot.slane %v712_v23, %v124_v9 }
 0x13f   :  { %v582_v12 = vmul.f32 %v1515_v50, %v578_v7  ;;  %v579_v25 = vadd.f32 1.4214138, %v575_v15 }
 0x140   :  { %v584_v13 = vadd.f32 -0.28449672, %v580_v8  ;;  %v581_v20 = vmul.f32 %v1517_v58, %v577_v14 }
 0x141   :  { %v586_v16 = vadd.f32 -0.28449672, %v582_v12  ;;  %v583_v31 = vmul.f32 %v1519_v63, %v579_v25 }
 0x142   :  { %v588_v19 = vmul.f32 %v1513_v49, %v584_v13  ;;  %v585_v28 = vadd.f32 -0.28449672, %v581_v20 }
 0x143   :  { %v590_v26 = vmul.f32 %v1515_v50, %v586_v16  ;;  %v587_v35 = vadd.f32 -0.28449672, %v583_v31 }
 0x144   :  { %v592_v27 = vadd.f32 0.2548296, %v588_v19  ;;  %v589_v34 = vmul.f32 %v1517_v58, %v585_v28 }
 0x145   :  { %v594_v32 = vadd.f32 0.2548296, %v590_v26  ;;  %v591_v41 = vmul.f32 %v1519_v63, %v587_v35 }
 0x146   :  { %v596_v33 = vmul.f32 %v1513_v49, %v592_v27  ;;  %v593_v40 = vadd.f32 0.2548296, %v589_v34 }
 0x147   :  { %v598_v37 = vmul.f32 %v1515_v50, %v594_v32  ;;  %v595_v45 = vadd.f32 0.2548296, %v591_v41 }
 0x148   :  { %v616_v39 = vmul.f32 %v1521_v36, %v596_v33  ;;  %v597_v44 = vmul.f32 %v1517_v58, %v593_v40  ;;  %v540_v58 = vmul.f32 0.5, %v1641_v17 }
 0x149   :  { %v618_v42 = vmul.f32 %v1523_v38, %v598_v37  ;;  %v599_v52 = vmul.f32 %v1519_v63, %v595_v45 }
 0x14a   :  { %v620_v43 = vsub.f32 1.0, %v616_v39  ;;  %v617_v51 = vmul.f32 %v1525_v46, %v597_v44 }
 0x14b   :  { %v622_v47 = vsub.f32 1.0, %v618_v42  ;;  %v619_v55 = vmul.f32 %v1527_v53, %v599_v52 }
 0x14c   :  { %v628_v48 = vsub.f32 0.0, %v620_v43  ;;  %v621_v50 = vsub.f32 1.0, %v617_v51 }
 0x14d   :  { %v630_v49 = vsub.f32 0.0, %v622_v47  ;;  %v623_v60 = vsub.f32 1.0, %v619_v55 }
 0x14e   :  { %v632_v54 = vsel %vm624_vm0, %v620_v43, %v628_v48  ;;  %v629_v59 = vsub.f32 0.0, %v621_v50 }
 0x14f   :  { %v634_v56 = vsel %vm626_vm1, %v622_v47, %v630_v49  ;;  %v636_v57 = vadd.f32 1.0, %v632_v54  ;;  %v631_v63 = vsub.f32 0.0, %v623_v60 }
 0x150   :  { %v638_v61 = vadd.f32 1.0, %v634_v56  ;;  %v633_v62 = vsel %vm625_vm2, %v621_v50, %v629_v59 }
 0x151   :  { %v637_v21 = vadd.f32 1.0, %v633_v62  ;;  %v640_v1 = vmul.f32 %v636_v57, %v540_v58  ;;  %v635_v2 = vsel %vm627_vm3, %v623_v60, %v631_v63 }
 0x152   :  { %v639_v7 = vadd.f32 1.0, %v635_v2  ;;  %v642_v8 = vmul.f32 %v638_v61, %v542_v22 }
 0x153   :  { %v641_v4 = vmul.f32 %v637_v21, %v541_v0  ;;  %v644_v17 = vpack.c.bf16 %v640_v1, %v640_v1 }
 0x154   :  { %v643_v10 = vmul.f32 %v639_v7, %v543_v3  ;;  %v646_v12 = vpack.c.bf16 %v642_v8, %v642_v8 }
 0x155   :  { %v645_v29 = vpack.c.bf16 %v641_v4, %v641_v4 }
 0x156   :  { %v647_v11 = vpack.c.bf16 %v643_v10, %v643_v10 }
 0x157   :  { %1076 = vmatprep.mubr.bf16.mxu0 %v645_v29 }
 0x158   :  { %1077 = vmatmul.mubr.bf16.vlgmr.msra.gmra.mxu0 %v644_v17  ;;  %1117 = vmatprep.mubr.bf16.mxu1 %v647_v11 }
 0x159   :  { %1118 = vmatmul.mubr.bf16.vlgmr.msra.gmra.mxu1 %v646_v12 }
 0x218   :  { %v1078_v30 = vpop.f32.mrf.mxu0 }
 0x219   :  { %v1079_v13 = vadd.f32 %v1078_v30, %v717_v18  ;;  %v1119_v14 = vpop.f32.mrf.mxu1 }
 0x21a   :  { %v1080_v15 = vpop.f32.mrf.mxu0 }
 0x21b   :  { %v1120_v16 = vadd.f32 %v1119_v14, %v1079_v13  ;;  %v1081_v19 = vadd.f32 %v1080_v15, %v721_v24  ;;  %v1121_v20 = vpop.f32.mrf.mxu1 }
 0x21c   :  { %v1082_v25 = vpop.f32.mrf.mxu0 }
 0x21d   :  { %v1128_v26 = vmul.f32 0.70710677, %v1120_v16  ;;  %v1122_v27 = vadd.f32 %v1121_v20, %v1081_v19  ;;  %v1123_v28 = vpop.f32.mrf.mxu1  ;;  %v1126_v7 = vmul.f32 0.5, %v1120_v16 }
 0x21e   :  { %v1083_v31 = vpop.f32.mrf.mxu0 }
 0x21f   :  { %v1130_v32 = vand.u32 2147483647, %v1128_v26  ;;  %v1129_v33 = vmul.f32 0.70710677, %v1122_v27  ;;  %v1124_v34 = vpop.f32.mrf.mxu1  ;;  %vm1168_vm4 = vcmp.ge.f32.partialorder %v1128_v26, 0.0  ;;  %v1127_v11 = vmul.f32 0.5, %v1122_v27 }
 0x221   :  { %v1132_v35 = vmul.f32 0.3275911, %v1130_v32  ;;  %v1131_v6 = vand.u32 2147483647, %v1129_v33  ;;  %v1156_v37 = vsub.f32 0.0, %v1130_v32  ;;  %vm1169_vm5 = vcmp.ge.f32.partialorder %v1129_v33, 0.0 }
 0x223   :  { %v1134_v36 = vadd.f32 1.0, %v1132_v35  ;;  %v1133_v5 = vmul.f32 0.3275911, %v1131_v6  ;;  %v1157_v38 = vsub.f32 0.0, %v1131_v6  ;;  %v1158_v39 = vmul.f32 %v1156_v37, %v1130_v32 }
 0x225   :  { %1528 = vrcp.f32 %v1134_v36  ;;  %v1135_v9 = vadd.f32 1.0, %v1133_v5  ;;  %v1159_v41 = vmul.f32 %v1157_v38, %v1131_v6  ;;  %v1160_v43 = vmul.f32 1.442695, %v1158_v39 }
 0x227   :  { %1530 = vrcp.f32 %v1135_v9  ;;  %v1162_v47 = vmul.f32 1.442695, %v1159_v41 }
 0x228   :  { %1532 = vpow2.f32 %v1160_v43 }
 0x229   :  { %1534 = vpow2.f32 %v1162_v47 }
 0x232   :  { %v1529_v40 = vpop.eup %1528 }
 0x233   :  { %v1138_v42 = vmul.f32 1.0614054, %v1529_v40 }
 0x234   :  { %v1531_v44 = vpop.eup %1530 }
 0x235   :  { %v1140_v45 = vadd.f32 -1.4531521, %v1138_v42  ;;  %v1139_v46 = vmul.f32 1.0614054, %v1531_v44  ;;  %v1533_v61 = vpop.eup %1532 }
 0x236   :  { %v1535_v21 = vpop.eup %1534 }
 0x237   :  { %v1142_v48 = vmul.f32 %v1529_v40, %v1140_v45  ;;  %v1141_v51 = vadd.f32 -1.4531521, %v1139_v46 }
 0x239   :  { %v1144_v52 = vadd.f32 1.4214138, %v1142_v48  ;;  %v1143_v53 = vmul.f32 %v1531_v44, %v1141_v51 }
 0x23b   :  { %v1146_v49 = vmul.f32 %v1529_v40, %v1144_v52  ;;  %v1145_v54 = vadd.f32 1.4214138, %v1143_v53 }
 0x23d   :  { %v1148_v50 = vadd.f32 -0.28449672, %v1146_v49  ;;  %v1147_v55 = vmul.f32 %v1531_v44, %v1145_v54 }
 0x23f   :  { %v1150_v56 = vmul.f32 %v1529_v40, %v1148_v50  ;;  %v1149_v57 = vadd.f32 -0.28449672, %v1147_v55 }
 0x241   :  { %v1152_v59 = vadd.f32 0.2548296, %v1150_v56  ;;  %v1151_v60 = vmul.f32 %v1531_v44, %v1149_v57 }
 0x243   :  { %v1154_v58 = vmul.f32 %v1529_v40, %v1152_v59  ;;  %v1153_v62 = vadd.f32 0.2548296, %v1151_v60 }
 0x245   :  { %v1164_v63 = vmul.f32 %v1533_v61, %v1154_v58  ;;  %v1155_v0 = vmul.f32 %v1531_v44, %v1153_v62 }
 0x247   :  { %v1166_v1 = vsub.f32 1.0, %v1164_v63  ;;  %v1165_v22 = vmul.f32 %v1535_v21, %v1155_v0 }
 0x249   :  { %v1170_v2 = vsub.f32 0.0, %v1166_v1  ;;  %v1167_v3 = vsub.f32 1.0, %v1165_v22 }
 0x24b   :  { %v1172_v4 = vsel %vm1168_vm4, %v1166_v1, %v1170_v2  ;;  %v1171_v29 = vsub.f32 0.0, %v1167_v3 }
 0x24c   :  { %v1174_v8 = vadd.f32 1.0, %v1172_v4 }
 0x24d   :  { %v1173_v17 = vsel %vm1169_vm5, %v1167_v3, %v1171_v29 }
 0x24e   :  { %v1176_v10 = vmul.f32 %v1174_v8, %v1126_v7  ;;  %v1175_v12 = vadd.f32 1.0, %v1173_v17 }
 0x250   :  { %1178 = vst [vmem:[%s1691_s5] sm:$0xff] %v1176_v10  ;;  %v1177_v23 = vmul.f32 %v1175_v12, %v1127_v11 }
 0x252   :  { %1179 = vst [vmem:[%s1691_s5 + $0x8] sm:$0xff] %v1177_v23 }
 0x253   :  { %1184 = vsyncpa [#allocation3], 1 }
 0x254   :  { %1185 = vsyncpa [#allocation5], 1 }

</bundles_post_ra>
